<compile_context>
chip_gen: v7x
topology: tpu7x:2x2x1
jax: 0.10.0
libtpu: 0.0.40
codegen_flags: <defaults>
</compile_context>

<pallas_src>
import jax
import jax.numpy as jnp
from jax.experimental import pallas as pl
from jax.experimental.pallas import tpu as pltpu


# ----------------------------------------------------------------------------
# Kernel
# ----------------------------------------------------------------------------
def _mlp_kernel(x_ref, w1_ref, b1_ref, w2_ref, b2_ref, w3_ref, b3_ref, o_ref):
    # x_ref: [8, TB] -- features on sublanes, batch tile on lanes (f32 or bf16).
    x = x_ref[...]

    # Layer 1: [16, 8] @ [8, TB] -> [16, TB]   (MXU, f32 accumulate)
    h1 = jnp.dot(w1_ref[...], x, preferred_element_type=jnp.float32)
    h1 = jnp.maximum(h1 + b1_ref[...], 0.0)           # f32 bias + ReLU on VPU
    h1 = h1.astype(w2_ref.dtype)                      # no-op on the f32 path

    # Layer 2: [32, 16] @ [16, TB] -> [32, TB]  (MXU, f32 accumulate)
    h2 = jnp.dot(w2_ref[...], h1, preferred_element_type=jnp.float32)
    h2 = jnp.maximum(h2 + b2_ref[...], 0.0)           # [32, TB] f32

    # Layer 3 (32 -> 1): keep it off the MXU.  VPU multiply, fold the 32
    # sublane rows down to 8 with plain VALU adds (static 8-row slices stay on
    # (8,128) tile boundaries), then a single 8-row XLU reduce.
    p = w3_ref[...] * h2                               # [32, TB], w3 is [32, 1]
    p8 = p[0:8] + p[8:16] + p[16:24] + p[24:32]        # [8, TB] (VPU)
    out = jnp.sum(p8, axis=0, keepdims=True) + b3_ref[0]   # [1, TB] (+ SMEM scalar)
    o_ref[...] = out


# ----------------------------------------------------------------------------
# Tiling / launch helpers
# ----------------------------------------------------------------------------
def _cdiv(a, b):
    return -(-a // b)


def _round_up(n, m):
    return _cdiv(n, m) * m


def _choose_tiling(n_rows, batch_tile):
    """Pick (tb, bp): lane-tile size and padded batch with bp % tb == 0.

    tb is a multiple of 128; the grid gets >= 2 steps whenever the batch spans
    >= 2 lane groups so the 'parallel' axis can be split across the 2 TCs on
    v7x (no-op on single-TC v5e/v6e)."""
    m = max(1, _cdiv(n_rows, 128))            # number of 128-lane groups
    nsteps = max(1, _cdiv(m * 128, batch_tile))
    if m >= 2:
        nsteps = max(nsteps, 2)
    nsteps = min(nsteps, m)
    k = _cdiv(m, nsteps)
    tb = 128 * k
    nsteps = _cdiv(m, k)
    return tb, tb * nsteps


def _run(xt, params, tb):
    """xt: [8, bp] lane-dense, bp % tb == 0. Returns [1, bp] float32."""
    w1, b1, w2, b2, w3, b3 = params
    bp = xt.shape[1]
    grid = (bp // tb,)

    cdt = xt.dtype
    itemsize = xt.dtype.itemsize
    # Cast only the MXU operands to the compute dtype; everything post-matmul
    # stays f32 (v5e's VPU has no bf16).
    w1c = w1.astype(cdt)
    w2c = w2.astype(cdt)
    b3s = b3.reshape(-1).astype(jnp.float32)           # (1,) SMEM scalar

    # Full-block, constant index_map -> resident in VMEM across grid steps.
    resident = lambda a: pl.BlockSpec(a.shape, lambda i: (0, 0))

    # Advisory cost hint for XLA's scheduler.
    flops = 2 * bp * (8 * 16 + 16 * 32 + 32 * 1)
    bytes_accessed = (xt.size * itemsize + bp * 4
                      + sum(int(p.size) * 4 for p in params))

    # Explicit scoped-VMEM budget so the big lane tile is portable across
    # v5e (16 MiB default) / v6e / v7x (32 MiB default, 64 MiB physical):
    # double-buffered x + double-buffered output row + live f32 intermediates
    # (h1/h2/p/p8) + weights/slack, with 2x margin, capped well under 64 MiB.
    vmem_budget = (2 * 8 * tb * itemsize
                   + 2 * tb * 4
                   + (16 + 32 + 32 + 8) * tb * 4
                   + (1 << 20))
    vmem_limit = int(min(max(2 * vmem_budget, 16 << 20), 48 << 20))

    return pl.pallas_call(
        _mlp_kernel,
        out_shape=jax.ShapeDtypeStruct((1, bp), jnp.float32),
        grid=grid,
        in_specs=[
            # x: streamed per batch tile (default double-buffering is enough
            # to hide the DMA at these tile sizes).
            pl.BlockSpec((8, tb), lambda i: (0, i)),
            resident(w1c), resident(b1),
            resident(w2c), resident(b2),
            resident(w3),
            # b3: single scalar -> SMEM (avoids a padded (8,128) VMEM tile).
            pl.BlockSpec(memory_space=pltpu.MemorySpace.SMEM),
        ],
        out_specs=pl.BlockSpec((1, tb), lambda i: (0, i)),
        compiler_params=pltpu.CompilerParams(
            dimension_semantics=("parallel",),
            vmem_limit_bytes=vmem_limit),
        cost_estimate=pl.CostEstimate(
            flops=flops, transcendentals=0, bytes_accessed=int(bytes_accessed)),
    )(xt, w1c, b1, w2c, b2, w3, b3s)


# ----------------------------------------------------------------------------
# Public entry points
# ----------------------------------------------------------------------------
def vgg_reg_forward_lanes(xt, params, *, batch_tile=32768):
    """Fast path: xt already lane-dense [8, B] (features on sublanes, batch on
    lanes). No wrapper transpose -> no extra HBM round-trip. Returns [1, B]."""
    bp0 = xt.shape[1]
    tb, bp = _choose_tiling(bp0, batch_tile)
    if bp != bp0:
        xt = jnp.pad(xt, ((0, 0), (0, bp - bp0)))
    out = _run(xt, params, tb)
    return out[:, :bp0]


def vgg_reg_forward(x, params, *, batch_tile=32768, compute_dtype=jnp.float32):
    """PyTorch-shaped wrapper: x [B, 8] -> [B, 1].

    Does exactly one pad+transpose copy into the lane-dense orientation (layout
    plumbing, fused by XLA). Producers that can emit [8, B] directly should
    call vgg_reg_forward_lanes instead and skip this copy entirely."""
    B = x.shape[0]
    tb, bp = _choose_tiling(B, batch_tile)
    xt = jnp.pad(x.astype(compute_dtype).T, ((0, 0), (0, bp - B)))  # [8, bp]
    out_t = _run(xt, params, tb)
    return out_t[:, :B].T                                           # [B, 1]


# ----------------------------------------------------------------------------
# Params / reference
# ----------------------------------------------------------------------------
def init_params(key):
    """Deterministic init mimicking nn.Linear (uniform +-1/sqrt(fan_in)).
    Weights PyTorch-native [out, in]; biases as [out, 1] columns so they
    broadcast along the lane (batch) axis; w3 stored as a [32, 1] column for
    the VPU/XLU reduction in the kernel."""
    dims = [(8, 16), (16, 32), (32, 1)]
    params = []
    for (fan_in, fan_out) in dims:
        key, kw, kb = jax.random.split(key, 3)
        bound = 1.0 / jnp.sqrt(fan_in)
        w = jax.random.uniform(kw, (fan_out, fan_in), jnp.float32, -bound, bound)
        b = jax.random.uniform(kb, (fan_out, 1), jnp.float32, -bound, bound)
        params += [w, b]
    w1, b1, w2, b2, w3, b3 = params
    return (w1, b1, w2, b2, w3.T, b3)  # w3 -> [32, 1]


def reference_forward(x, params):
    w1, b1, w2, b2, w3c, b3 = params
    h1 = jnp.maximum(x @ w1.T + b1.T, 0.0)
    h2 = jnp.maximum(h1 @ w2.T + b2.T, 0.0)
    return h2 @ w3c + b3.T


if __name__ == "__main__":
    key = jax.random.PRNGKey(0)
    key, kx1, kx2 = jax.random.split(key, 3)
    params = init_params(key)

    # Small PyTorch-shaped input: batch=2, in_features=8.
    B = 2
    x = jax.random.normal(kx1, (B, 8), jnp.float32)
    out = jax.block_until_ready(vgg_reg_forward(x, params))
    ref = reference_forward(x, params)
    assert out.shape == (B, 1), out.shape
    assert jnp.allclose(out, ref, atol=1e-5, rtol=1e-5), (out, ref)

    # Multi-step grid (exercises the v7x >=2-step split and ragged padding).
    B2 = 300
    x2 = jax.random.normal(kx2, (B2, 8), jnp.float32)
    out2 = jax.block_until_ready(vgg_reg_forward(x2, params))
    ref2 = reference_forward(x2, params)
    assert out2.shape == (B2, 1), out2.shape
    assert jnp.allclose(out2, ref2, atol=1e-5, rtol=1e-5)

    # Optional bf16-input path (halves the dominant HBM stream); looser
    # tolerance vs the f32 reference due to input/weight quantization.
    out_bf = jax.block_until_ready(
        vgg_reg_forward(x2, params, compute_dtype=jnp.bfloat16))
    assert out_bf.shape == (B2, 1)
    assert jnp.allclose(out_bf, ref2, atol=1e-1, rtol=1e-1)

    # TODO(synk): self.features (VGG conv/BN/pool stack) is built in __init__
    # but never invoked by forward(), so it is intentionally not implemented.
    print("KERNEL_OK")
</pallas_src>

<mosaic_0001>
module attributes {stable_mosaic.version = 11 : i64} {
  func.func @_mlp_kernel(%arg0: i32, %arg1: memref<8x128xf32, #tpu.memory_space<vmem>>, %arg2: memref<16x8xf32, #tpu.memory_space<vmem>>, %arg3: memref<16x1xf32, #tpu.memory_space<vmem>>, %arg4: memref<32x16xf32, #tpu.memory_space<vmem>>, %arg5: memref<32x1xf32, #tpu.memory_space<vmem>>, %arg6: memref<32x1xf32, #tpu.memory_space<vmem>>, %arg7: memref<1xf32, #tpu.memory_space<smem>>, %arg8: memref<1x128xf32, #tpu.memory_space<vmem>>) attributes {dimension_semantics = [#tpu.dimension_semantics<parallel>], iteration_bounds = array<i64: 1>, scalar_prefetch = 0 : i64, scratch_operands = 0 : i64, tpu.core_type = #tpu.core_type<tc>, window_params = [{transform_indices = @transform_0, window_bounds = array<i64: 8, 128>}, {pipeline_mode = #tpu.pipeline_mode<synchronous>, transform_indices = @transform_1, window_bounds = array<i64: 16, 8>}, {pipeline_mode = #tpu.pipeline_mode<synchronous>, transform_indices = @transform_2, window_bounds = array<i64: 16, 1>}, {pipeline_mode = #tpu.pipeline_mode<synchronous>, transform_indices = @transform_3, window_bounds = array<i64: 32, 16>}, {pipeline_mode = #tpu.pipeline_mode<synchronous>, transform_indices = @transform_4, window_bounds = array<i64: 32, 1>}, {pipeline_mode = #tpu.pipeline_mode<synchronous>, transform_indices = @transform_5, window_bounds = array<i64: 32, 1>}, {transform_indices = @transform_6, window_bounds = array<i64: 1>}, {transform_indices = @transform_7, window_bounds = array<i64: 1, 128>}]} {
    %c0 = arith.constant 0 : index
    %c0_0 = arith.constant 0 : index
    %0 = vector.load %arg1[%c0, %c0_0] : memref<8x128xf32, #tpu.memory_space<vmem>>, vector<8x128xf32>
    %c0_1 = arith.constant 0 : index
    %c0_2 = arith.constant 0 : index
    %1 = vector.load %arg2[%c0_1, %c0_2] : memref<16x8xf32, #tpu.memory_space<vmem>>, vector<16x8xf32>
    %cst = arith.constant dense<0.000000e+00> : vector<16x128xf32>
    %2 = tpu.matmul %1, %0, %cst {dimension_numbers = #tpu.dot_dimension_numbers<[1], [0], [0], [1], [0, 0, 1, 1], [], []>} : vector<16x8xf32>, vector<8x128xf32>, vector<16x128xf32> -> vector<16x128xf32>
    %c0_3 = arith.constant 0 : index
    %c0_4 = arith.constant 0 : index
    %3 = vector.load %arg3[%c0_3, %c0_4] : memref<16x1xf32, #tpu.memory_space<vmem>>, vector<16x1xf32>
    %4 = vector.broadcast %3 : vector<16x1xf32> to vector<16x128xf32>
    %5 = arith.addf %2, %4 : vector<16x128xf32>
    %cst_5 = arith.constant 0.000000e+00 : f32
    %6 = vector.broadcast %cst_5 : f32 to vector<16x128xf32>
    %7 = arith.maximumf %5, %6 : vector<16x128xf32>
    %c0_6 = arith.constant 0 : index
    %c0_7 = arith.constant 0 : index
    %8 = vector.load %arg4[%c0_6, %c0_7] : memref<32x16xf32, #tpu.memory_space<vmem>>, vector<32x16xf32>
    %cst_8 = arith.constant dense<0.000000e+00> : vector<32x128xf32>
    %9 = tpu.matmul %8, %7, %cst_8 {dimension_numbers = #tpu.dot_dimension_numbers<[1], [0], [0], [1], [0, 0, 1, 1], [], []>} : vector<32x16xf32>, vector<16x128xf32>, vector<32x128xf32> -> vector<32x128xf32>
    %c0_9 = arith.constant 0 : index
    %c0_10 = arith.constant 0 : index
    %10 = vector.load %arg5[%c0_9, %c0_10] : memref<32x1xf32, #tpu.memory_space<vmem>>, vector<32x1xf32>
    %11 = vector.broadcast %10 : vector<32x1xf32> to vector<32x128xf32>
    %12 = arith.addf %9, %11 : vector<32x128xf32>
    %cst_11 = arith.constant 0.000000e+00 : f32
    %13 = vector.broadcast %cst_11 : f32 to vector<32x128xf32>
    %14 = arith.maximumf %12, %13 : vector<32x128xf32>
    %c0_12 = arith.constant 0 : index
    %c0_13 = arith.constant 0 : index
    %15 = vector.load %arg6[%c0_12, %c0_13] : memref<32x1xf32, #tpu.memory_space<vmem>>, vector<32x1xf32>
    %16 = vector.broadcast %15 : vector<32x1xf32> to vector<32x128xf32>
    %17 = arith.mulf %16, %14 : vector<32x128xf32>
    %18 = vector.extract_strided_slice %17 {offsets = [0, 0], sizes = [8, 128], strides = [1, 1]} : vector<32x128xf32> to vector<8x128xf32>
    %19 = vector.extract_strided_slice %17 {offsets = [8, 0], sizes = [8, 128], strides = [1, 1]} : vector<32x128xf32> to vector<8x128xf32>
    %20 = arith.addf %18, %19 : vector<8x128xf32>
    %21 = vector.extract_strided_slice %17 {offsets = [16, 0], sizes = [8, 128], strides = [1, 1]} : vector<32x128xf32> to vector<8x128xf32>
    %22 = arith.addf %20, %21 : vector<8x128xf32>
    %23 = vector.extract_strided_slice %17 {offsets = [24, 0], sizes = [8, 128], strides = [1, 1]} : vector<32x128xf32> to vector<8x128xf32>
    %24 = arith.addf %22, %23 : vector<8x128xf32>
    %cst_14 = arith.constant dense<0.000000e+00> : vector<128xf32>
    %25 = vector.multi_reduction <add>, %24, %cst_14 [0] : vector<8x128xf32> to vector<128xf32>
    %26 = vector.shape_cast %25 : vector<128xf32> to vector<1x128xf32>
    %c0_15 = arith.constant 0 : index
    %27 = memref.load %arg7[%c0_15] : memref<1xf32, #tpu.memory_space<smem>>
    %28 = vector.broadcast %27 : f32 to vector<1x128xf32>
    %29 = arith.addf %26, %28 : vector<1x128xf32>
    %c0_16 = arith.constant 0 : index
    %c0_17 = arith.constant 0 : index
    %30 = vector.load %arg8[%c0_16, %c0_17] : memref<1x128xf32, #tpu.memory_space<vmem>>, vector<1x128xf32>
    tpu.vector_store %arg8[%c0_16, %c0_17], %29 {strides = array<i32>} : memref<1x128xf32, #tpu.memory_space<vmem>>, vector<1x128xf32>,
    return
  }
  func.func @transform_0(%arg0: i32) -> (i32, i32) {
    %c0_i32 = arith.constant 0 : i32
    %c0_i32_0 = arith.constant 0 : i32
    return %c0_i32, %arg0 : i32, i32
  }
  func.func @transform_1(%arg0: i32) -> (i32, i32) {
    %c0_i32 = arith.constant 0 : i32
    %c0_i32_0 = arith.constant 0 : i32
    %c0_i32_1 = arith.constant 0 : i32
    return %c0_i32, %c0_i32_0 : i32, i32
  }
  func.func @transform_2(%arg0: i32) -> (i32, i32) {
    %c0_i32 = arith.constant 0 : i32
    %c0_i32_0 = arith.constant 0 : i32
    %c0_i32_1 = arith.constant 0 : i32
    return %c0_i32, %c0_i32_0 : i32, i32
  }
  func.func @transform_3(%arg0: i32) -> (i32, i32) {
    %c0_i32 = arith.constant 0 : i32
    %c0_i32_0 = arith.constant 0 : i32
    %c0_i32_1 = arith.constant 0 : i32
    return %c0_i32, %c0_i32_0 : i32, i32
  }
  func.func @transform_4(%arg0: i32) -> (i32, i32) {
    %c0_i32 = arith.constant 0 : i32
    %c0_i32_0 = arith.constant 0 : i32
    %c0_i32_1 = arith.constant 0 : i32
    return %c0_i32, %c0_i32_0 : i32, i32
  }
  func.func @transform_5(%arg0: i32) -> (i32, i32) {
    %c0_i32 = arith.constant 0 : i32
    %c0_i32_0 = arith.constant 0 : i32
    %c0_i32_1 = arith.constant 0 : i32
    return %c0_i32, %c0_i32_0 : i32, i32
  }
  func.func @transform_6(%arg0: i32) -> i32 {
    %c0_i32 = arith.constant 0 : i32
    %c0_i32_0 = arith.constant 0 : i32
    return %c0_i32 : i32
  }
  func.func @transform_7(%arg0: i32) -> (i32, i32) {
    %c0_i32 = arith.constant 0 : i32
    %c0_i32_0 = arith.constant 0 : i32
    return %c0_i32, %arg0 : i32, i32
  }
}

</mosaic_0001>

<bundles_post_ra>
// kernel: tpu_custom_call.1
= control target key start
LH: loop header
LB: loop body
LE: loop exit
PB: predicated region body
PF: predicated region fallthrough
CT: control target
= control target key end

     0   :  { %vm43_vm0 = vcmask 64512   ;;  %v376_v4 = vmov 0   ;;  %s488_s0 = inlined_call_operand.vmem [shape: f32[8,128], index: 0, kind: input, shape index: {}]   ;;  %s489_s1 = inlined_call_operand.vmem [shape: f32[16,8], index: 1, kind: input, shape index: {}]   ;;  %s490_s2 = inlined_call_operand.vmem [shape: f32[16,1], index: 2, kind: input, shape index: {}]   ;;  %s491_s3 = inlined_call_operand.vmem [shape: f32[32,16], index: 3, kind: input, shape index: {}]   ;;  %s492_s4 = inlined_call_operand.vmem [shape: f32[32,1], index: 4, kind: input, shape index: {}]   ;;  %s493_s5 = inlined_call_operand.vmem [shape: f32[32,1], index: 5, kind: input, shape index: {}]   ;;  %s494_s6 = inlined_call_operand.<no memory space> [shape: f32[1], index: 6, kind: input, shape index: {}]   ;;  %s495_s7 = inlined_call_operand.hbm [shape: f32[1,128], index: 7, kind: output, shape index: {}]  }
   0x1   :  { %v28_v0 = vld [vmem:[%s488_s0] sm:$0xff]  ;;  %v30_v2 = vld [vmem:[%s489_s1 + $0x8] sm:$0xff]  ;;  %350 = vset.pattern.permute.xlu0 %v376_v4 }
   0x2   :  { %v29_v1 = vld [vmem:[%s489_s1] sm:$0xff]  ;;  %327 = vmatprep.subr.mxu0 %v28_v0 }
   0x3   :  { %329 = vmatprep.mubr.msk.f32.mxu0 %vm43_vm0, %v29_v1  ;;  %v31_v3 = vld [vmem:[%s490_s2] sm:$0xff]  ;;  %328 = vmatpush3.msra.mxu0 %v28_v0 }
   0x4   :  { %13 = vsyncpa [#allocation4], 0  ;;  %330 = vmatmul.mubr.msk.f32.vlgmr.msra.gmra.mrb[0].mxu0 %vm43_vm0, %v30_v2  ;;  %35 = vperm.xlu0 %350, %v31_v3   ;;  %v32_v5 = vld [vmem:[%s490_s2 + $0x8] sm:$0xff]  ;;  %v133_v6 = vld [vmem:[%s492_s4 + $0x10] sm:$0xff]  ;;  %vm155_vm1 = vcmask 130048   ;;  %v295_v59 = vstv %s494_s6  ;;  %s377_s8 = smov [#allocation3]  }
   0x5   :  { %351 = vset.pattern.permute.xlu1 %v376_v4  ;;  %v257_v7 = vld [vmem:[%s493_s5] sm:$0xff]  ;;  %v259_v8 = vld [vmem:[%s493_s5 + $0x10] sm:$0xff]  ;;  %v132_v12 = vld [vmem:[%s492_s4 + $0x8] sm:$0xff]  ;;  %s304_s0 = sshll.u32 %s377_s8, 4  ;;  %s305_s0 = int_to_ptr.vmem [resolvable:$true] %s304_s0 }
   0x6   :  { %v127_v9 = vld [vmem:[%s491_s3] sm:$0xff]  ;;  %v129_v10 = vld [vmem:[%s491_s3 + $0x10] sm:$0xff]  ;;  %v134_v13 = vld [vmem:[%s492_s4 + $0x18] sm:$0xff]  ;;  %s352_s9 = scalar_lea.vmem %s305_s0, 16  ;;  %s356_s10 = scalar_lea.vmem %s305_s0, 32 }
   0x7   :  { %336 = vmatprep.mubr.msk.f32.mxu0 %vm155_vm1, %v127_v9  ;;  %339 = vmatprep.mubr.msk.f32.mxu1 %vm155_vm1, %v129_v10  ;;  %v131_v11 = vld [vmem:[%s492_s4] sm:$0xff]  ;;  %v258_v14 = vld [vmem:[%s493_s5 + $0x8] sm:$0xff]  ;;  %v260_v15 = vld [vmem:[%s493_s5 + $0x18] sm:$0xff]  ;;  %p353_p0 = scmp.ne.s32.totalorder %s305_s0, %s352_s9  ;;  %p357_p1 = scmp.lt.s32.totalorder %s305_s0, %s305_s0 }
   0x8   :  { %40 = vperm.xlu0 %350, %v32_v5   ;;  %137 = vperm.xlu1 %351, %v131_v11   ;;  %v128_v25 = vld [vmem:[%s491_s3 + $0x8] sm:$0xff]  ;;  %v130_v26 = vld [vmem:[%s491_s3 + $0x18] sm:$0xff]  ;;  %p358_p2 = scmp.lt.s32.totalorder %s356_s10, %s352_s9 }
   0xa   :  { %p359_p3 = por %p358_p2, %p357_p1 }
   0xc   :  { %147 = vperm.xlu0 %350, %v133_v6   ;;  %142 = vperm.xlu1 %351, %v132_v12   ;;  %p360_p4 = pnand %p359_p3, %p353_p0 }
  0x10   :  { %263 = vperm.xlu0 %350, %v257_v7   ;;  %152 = vperm.xlu1 %351, %v134_v13  }
  0x14   :  { %273 = vperm.xlu0 %350, %v259_v8   ;;  %268 = vperm.xlu1 %351, %v258_v14  }
  0x18   :  { %278 = vperm.xlu1 %351, %v260_v15  }
  0x83   :  { %v36_v16 = vpop.permute.xlu0 %35 }
  0x87   :  { %v41_v17 = vpop.permute.xlu0 %40  ;;  %v138_v27 = vpop.permute.xlu1 %137 }
  0x8b   :  { %v143_v28 = vpop.permute.xlu1 %142  ;;  %v148_v29 = vpop.permute.xlu0 %147 }
  0x8f   :  { %v153_v30 = vpop.permute.xlu1 %152  ;;  %v264_v31 = vpop.permute.xlu0 %263 }
  0x93   :  { %v269_v40 = vpop.permute.xlu1 %268  ;;  %v274_v47 = vpop.permute.xlu0 %273 }
  0x97   :  { %v279_v50 = vpop.permute.xlu1 %278 }
  0xd7   :  { %v331_v18 = vpop.f32.mrb[0].mxu0 }
  0xd8   :  { %v122_v19 = vadd.f32 %v331_v18, %v41_v17  ;;  %v116_v20 = vpop.f32.mrb[1].mxu0 }
  0xd9   :  { %v117_v21 = vadd.f32 %v116_v20, %v36_v16 }
  0xda   :  { %v126_v22 = vmax.f32 %v122_v19, 0.0 }
  0xdb   :  { %v125_v23 = vmax.f32 %v117_v21, 0.0 }
  0xdd   :  { %v342_v24 = vpack.c.bf16 %v126_v22, %v125_v23 }
  0xdf   :  { %343 = vmatprep.subr.bf16.mxu0 %v342_v24  ;;  %346 = vmatprep.subr.bf16.mxu1 %v342_v24 }
  0xe0   :  { %345 = vmatpush3.bf16.msra.mxu0 %v342_v24  ;;  %347 = vmatpush3.bf16.msra.mxu1 %v342_v24 }
  0xe3   :  { %337 = vmatmul.mubr.msk.f32.vlgmr.msra.gmra.mrb[2].mxu0 %vm155_vm1, %v128_v25  ;;  %340 = vmatmul.mubr.msk.f32.vlgmr.msra.gmra.mrb[0].mxu1 %vm155_vm1, %v130_v26 }
 0x1b6   :  { %v338_v32 = vpop.f32.mrb[2].mxu0  ;;  %v341_v33 = vpop.f32.mrb[0].mxu1 }
 0x1b7   :  { %v240_v34 = vadd.f32 %v338_v32, %v143_v28  ;;  %v234_v35 = vpop.f32.mrb[3].mxu0  ;;  %v244_v36 = vpop.f32.mrb[1].mxu1  ;;  %v250_v37 = vadd.f32 %v341_v33, %v153_v30 }
 0x1b8   :  { %v235_v38 = vadd.f32 %v234_v35, %v138_v27  ;;  %v245_v39 = vadd.f32 %v244_v36, %v148_v29 }
 0x1b9   :  { %v254_v41 = vmax.f32 %v240_v34, 0.0  ;;  %v256_v45 = vmax.f32 %v250_v37, 0.0 }
 0x1ba   :  { %v253_v42 = vmax.f32 %v235_v38, 0.0  ;;  %v255_v43 = vmax.f32 %v245_v39, 0.0 }
 0x1bb   :  { %v282_v44 = vmul.f32 %v269_v40, %v254_v41  ;;  %v284_v51 = vmul.f32 %v279_v50, %v256_v45 }
 0x1bc   :  { %v281_v46 = vmul.f32 %v264_v31, %v253_v42  ;;  %v283_v49 = vmul.f32 %v274_v47, %v255_v43 }
 0x1be   :  { %v285_v48 = vadd.f32 %v282_v44, %v281_v46 }
 0x1c0   :  { %v286_v52 = vadd.f32 %v285_v48, %v283_v49 }
 0x1c2   :  { %v287_v53 = vadd.f32 %v286_v52, %v284_v51 }
 0x1c4   :  { %v288_v54 = vrot.slane %v287_v53, 4 }
 0x1c6   :  { %v289_v55 = vadd.f32 %v288_v54, %v287_v53 }
 0x1c8   :  { %v290_v56 = vrot.slane %v289_v55, 2 }
 0x1ca   :  { %v291_v57 = vadd.f32 %v290_v56, %v289_v55 }
 0x1cc   :  { %v292_v58 = vrot.slane %v291_v57, 1 }
 0x1ce   :  { %v293_v60 = vadd.f32 %v292_v58, %v291_v57 }
 0x1d0   :  { %v296_v61 = vadd.f32 %v295_v59, %v293_v60 }
 0x1d2   :  { %297 = vst [vmem:[#allocation3] sm:$0x1] %v296_v61 }
 0x1d3   :  { %363 = shalt.err (!%p360_p4)
}
 0x1d4   :  { %s364_s12 = scalar_lea.hbm %s495_s7, 16 }
 0x1d5   :  { %p365_p5 = scmp.ne.s32.totalorder %s495_s7, %s364_s12  ;;  %p368_p6 = scmp.lt.u32.totalorder %s364_s12, %s495_s7 }
 0x1d7   :  { %p370_p7 = pnand %p368_p6, %p365_p5 }
 0x1d9   :  { %373 = shalt.err (!%p370_p7)
}
 0x1da   :  { %307 = dma.vmem_to_hbm [thread:$0]  %s305_s0, 16, %s495_s7, [#allocation4]  }
 0x1db   :  { %374 = dma.done.wait [#allocation4], 16  }
 0x1dc   :  { %375 = vsyncadd [#allocation4], 4294967280 }
 0x1dd   :  { %311 = vsyncpa [#allocation4], 1 }

</bundles_post_ra>
